<compile_context>
chip_gen: v5e
topology: v5e:2x2
jax: 0.10.0
libtpu: 0.0.40
codegen_flags: <defaults>
</compile_context>

<pallas_src>
import functools

import jax
import jax.numpy as jnp
from jax.experimental import pallas as pl
from jax.experimental.pallas import tpu as pltpu


def _round_up(n, m):
    return ((n + m - 1) // m) * m


def _pick_batch_block(batch, channels, itemsize):
    """Batch samples per tile so rows = BB*C fill the sublane packing.

    rows must be a multiple of 8 (f32 sublane tile) or equal the full B*C
    extent (full-dim blocks are always legal); prefer fully packed tiles
    (multiple of 8 for f32, 16 for bf16)."""
    sub = 8 * max(1, 4 // itemsize)        # 8 f32, 16 bf16, 32 int8/fp8

    def legal(bb):
        rows = bb * channels
        return rows % 8 == 0 or bb == batch

    for bb in range(1, batch + 1):         # smallest legal, fully packed BB
        if legal(bb) and (bb * channels) % sub == 0:
            return bb
    for bb in range(1, batch + 1):         # else smallest legal BB reaching `sub` rows
        if legal(bb) and bb * channels >= sub:
            return bb
    return batch                            # full batch in one block: always legal


def _sideways_mlp_kernel(x_ref, w1_ref, b1_ref, w2_ref, b2_ref, o_ref, *,
                         bb, c, h, chunk, use_mxu):
    b1f = b1_ref[...]                                    # (H, 1) f32
    b2f = b2_ref[...]                                    # (C, 1) f32
    if not use_mxu:
        w1f = w1_ref[...].astype(jnp.float32)            # (H, C)
        w2f = w2_ref[...].astype(jnp.float32)            # (C, H)

    def process(off, width):
        xc = x_ref[:, pl.ds(off, width)]                 # (bb*C, width), native dtype
        xcf = xc.astype(jnp.float32)
        outs = []
        for b in range(bb):                              # static, tiny (BB<=4 typical)
            lo, hi = b * c, (b + 1) * c
            xbf = xcf[lo:hi, :]                          # (C, width) f32
            if use_mxu:
                hb = jnp.dot(w1_ref[...], xc[lo:hi, :],
                             preferred_element_type=jnp.float32)
            else:                                        # unrolled VPU broadcast-FMA
                hb = w1f[:, 0:1] * xbf[0:1, :]
                for cc in range(1, c):
                    hb = hb + w1f[:, cc:cc + 1] * xbf[cc:cc + 1, :]
            hb = jnp.maximum(hb + b1f, 0.0)              # (H, width), f32 epilogue
            if use_mxu:
                rb = jnp.dot(w2_ref[...], hb.astype(w2_ref.dtype),
                             preferred_element_type=jnp.float32)
            else:
                rb = w2f[:, 0:1] * hb[0:1, :]
                for hh in range(1, h):
                    rb = rb + w2f[:, hh:hh + 1] * hb[hh:hh + 1, :]
            outs.append(rb + b2f + xbf)                  # residual add in f32
        oc = outs[0] if bb == 1 else jnp.concatenate(outs, axis=0)   # (bb*C, width)
        o_ref[:, pl.ds(off, width)] = oc.astype(o_ref.dtype)         # dense store

    tile_l = x_ref.shape[-1]
    n_full = tile_l // chunk
    rem = tile_l - n_full * chunk

    if n_full == 1:
        process(0, chunk)
    elif n_full > 1:
        @pl.loop(0, n_full)                              # bounds vreg live ranges
        def _(step):
            process(pl.multiple_of(step * chunk, chunk), chunk)
    if rem > 0:                                          # static tail chunk
        process(n_full * chunk, rem)


def sideways_mlp(x_ncl, w1, b1, w2, b2, *, compute_dtype=None, tile_l=None):
    """SidewaysMLP forward pass.

    x_ncl: (B, C, L)              (PyTorch NCL layout)
    w1:    (H, C) = fc1.weight[:, :, 0],  b1: (H,) = fc1.bias
    w2:    (C, H) = fc2.weight[:, :, 0],  b2: (C,) = fc2.bias
    compute_dtype: optional narrow dtype (e.g. jnp.bfloat16) for x / weights /
      output (full HBM-byte saving); epilogue math stays f32.
    """
    B, C, L = x_ncl.shape
    H = w1.shape[0]

    if compute_dtype is not None:
        x_ncl = x_ncl.astype(compute_dtype)
        w1 = w1.astype(compute_dtype)
        w2 = w2.astype(compute_dtype)
    out_dtype = x_ncl.dtype                 # bf16 in -> bf16 out (both streams narrow)
    b1_2d = b1.astype(jnp.float32).reshape(H, 1)
    b2_2d = b2.astype(jnp.float32).reshape(C, 1)

    x2 = x_ncl.reshape(B * C, L)            # free view: length stays the lane axis
    in_itemsize = jnp.dtype(x2.dtype).itemsize
    out_itemsize = jnp.dtype(out_dtype).itemsize

    BB = _pick_batch_block(B, C, in_itemsize)
    ROWS = BB * C
    use_mxu = (C >= 128 and H >= 128)       # tiny contractions stay on the VPU

    if tile_l is None:
        # ~1-2 MiB per stream per grid step; multiple of 512 lanes; <=32768.
        cap = 2 * 1024 * 1024 // (ROWS * max(in_itemsize, out_itemsize))
        cap = max(512, min(32768, cap // 512 * 512))
        tile_l = min(L, cap)
        # Keep >=2 balanced grid steps when there is enough work, so v7x's two
        # TensorCores can both be used via the "parallel" grid axes.
        if (-(-B // BB)) * (-(-L // tile_l)) == 1 and L > 1024:
            tile_l = min(L, _round_up((L + 1) // 2, 512))
    else:
        tile_l = min(tile_l, L)

    chunk = min(512, tile_l)                # in-kernel lane chunk (hidden stays in vregs)
    grid = (pl.cdiv(B, BB), pl.cdiv(L, tile_l))

    cost = pl.CostEstimate(
        flops=4 * B * L * C * H,                                   # two matmuls
        transcendentals=0,
        bytes_accessed=(B * C * L * (in_itemsize + out_itemsize)
                        + 2 * H * C * in_itemsize                  # weights
                        + (H + C) * 4),                            # f32 biases
    )

    # Double-buffered x/out tiles plus weights/hidden, with headroom; explicit
    # so the v5e 16 MiB scoped default never limits us, <=48 MiB for v7x headroom.
    block_bytes = ROWS * tile_l * (in_itemsize + out_itemsize)
    vmem_limit = int(min(48 * 1024 * 1024,
                         max(32 * 1024 * 1024, 3 * block_bytes)))

    kernel = functools.partial(_sideways_mlp_kernel, bb=BB, c=C, h=H,
                               chunk=chunk, use_mxu=use_mxu)

    out2 = pl.pallas_call(
        kernel,
        out_shape=jax.ShapeDtypeStruct((B * C, L), out_dtype),
        grid_spec=pltpu.PrefetchScalarGridSpec(
            num_scalar_prefetch=0,
            grid=grid,
            in_specs=[
                pl.BlockSpec((ROWS, tile_l), lambda b, l: (b, l)),  # x tile (lane dense)
                pl.BlockSpec((H, C), lambda b, l: (0, 0)),          # W1 (VMEM resident)
                pl.BlockSpec((H, 1), lambda b, l: (0, 0)),          # b1 (VMEM resident)
                pl.BlockSpec((C, H), lambda b, l: (0, 0)),          # W2 (VMEM resident)
                pl.BlockSpec((C, 1), lambda b, l: (0, 0)),          # b2 (VMEM resident)
            ],
            out_specs=pl.BlockSpec((ROWS, tile_l), lambda b, l: (b, l)),
        ),
        compiler_params=pltpu.CompilerParams(
            dimension_semantics=("parallel", "parallel"),
            vmem_limit_bytes=vmem_limit,
        ),
        cost_estimate=cost,
    )(x2, w1, b1_2d, w2, b2_2d)

    return out2.reshape(B, C, L)


def _reference(x, w1, b1, w2, b2):
    hp = jax.lax.Precision.HIGHEST
    h = jnp.maximum(jnp.einsum("hc,bcl->bhl", w1, x, precision=hp)
                    + b1[None, :, None], 0.0)
    r = jnp.einsum("ch,bhl->bcl", w2, h, precision=hp) + b2[None, :, None]
    return r + x


def _check(B, C, L, ratio, compute_dtype=None, atol=1e-5, rtol=1e-5):
    H = ratio * C
    key = jax.random.PRNGKey(0)
    kx, kw1, kw2 = jax.random.split(key, 3)
    x = jax.random.normal(kx, (B, C, L), dtype=jnp.float32)
    # Conv1d(kernel_size=1) init: weight ~ N(0, 0.02), bias = 0.
    w1 = 0.02 * jax.random.normal(kw1, (H, C), dtype=jnp.float32)   # fc1.weight[:, :, 0]
    w2 = 0.02 * jax.random.normal(kw2, (C, H), dtype=jnp.float32)   # fc2.weight[:, :, 0]
    b1 = jnp.zeros((H,), jnp.float32)
    b2 = jnp.zeros((C,), jnp.float32)

    ref = _reference(x, w1, b1, w2, b2)
    out = jax.block_until_ready(
        sideways_mlp(x, w1, b1, w2, b2, compute_dtype=compute_dtype))
    assert out.shape == (B, C, L)
    assert jnp.allclose(out.astype(jnp.float32), ref, atol=atol, rtol=rtol), \
        f"mismatch at B={B} C={C} L={L} dtype={compute_dtype}"


if __name__ == "__main__":
    # Shapes consistent with the module: n_states=4, ratio=4.
    _check(2, 4, 16, 4)                                    # nominal small case, f32 exact
    _check(2, 4, 16, 4, compute_dtype=jnp.bfloat16,        # bf16 in/out path
           atol=5e-2, rtol=5e-2)
    _check(3, 4, 1600, 4)                                  # chunk loop + tail + partial batch block
    _check(2, 4, 2048, 4)                                  # balanced 2-tile L split (v7x dual-TC)
    print("KERNEL_OK")
</pallas_src>

<mosaic_0001>
module attributes {stable_mosaic.version = 11 : i64} {
  func.func @_sideways_mlp_kernel(%arg0: i32, %arg1: i32, %arg2: memref<8x16xf32, #tpu.memory_space<vmem>>, %arg3: memref<16x4xf32, #tpu.memory_space<vmem>>, %arg4: memref<16x1xf32, #tpu.memory_space<vmem>>, %arg5: memref<4x16xf32, #tpu.memory_space<vmem>>, %arg6: memref<4x1xf32, #tpu.memory_space<vmem>>, %arg7: memref<8x16xf32, #tpu.memory_space<vmem>>) attributes {dimension_semantics = [#tpu.dimension_semantics<parallel>, #tpu.dimension_semantics<parallel>], iteration_bounds = array<i64: 1, 1>, scalar_prefetch = 0 : i64, scratch_operands = 0 : i64, tpu.core_type = #tpu.core_type<tc>, window_params = [{transform_indices = @transform_0, window_bounds = array<i64: 8, 16>}, {pipeline_mode = #tpu.pipeline_mode<synchronous>, transform_indices = @transform_1, window_bounds = array<i64: 16, 4>}, {pipeline_mode = #tpu.pipeline_mode<synchronous>, transform_indices = @transform_2, window_bounds = array<i64: 16, 1>}, {pipeline_mode = #tpu.pipeline_mode<synchronous>, transform_indices = @transform_3, window_bounds = array<i64: 4, 16>}, {pipeline_mode = #tpu.pipeline_mode<synchronous>, transform_indices = @transform_4, window_bounds = array<i64: 4, 1>}, {transform_indices = @transform_5, window_bounds = array<i64: 8, 16>}]} {
    %c0 = arith.constant 0 : index
    %c0_0 = arith.constant 0 : index
    %0 = vector.load %arg4[%c0, %c0_0] : memref<16x1xf32, #tpu.memory_space<vmem>>, vector<16x1xf32>
    %c0_1 = arith.constant 0 : index
    %c0_2 = arith.constant 0 : index
    %1 = vector.load %arg6[%c0_1, %c0_2] : memref<4x1xf32, #tpu.memory_space<vmem>>, vector<4x1xf32>
    %c0_3 = arith.constant 0 : index
    %c0_4 = arith.constant 0 : index
    %2 = vector.load %arg3[%c0_3, %c0_4] : memref<16x4xf32, #tpu.memory_space<vmem>>, vector<16x4xf32>
    %c0_5 = arith.constant 0 : index
    %c0_6 = arith.constant 0 : index
    %3 = vector.load %arg5[%c0_5, %c0_6] : memref<4x16xf32, #tpu.memory_space<vmem>>, vector<4x16xf32>
    %c0_7 = arith.constant 0 : index
    %c0_8 = arith.constant 0 : index
    %4 = vector.load %arg2[%c0_7, %c0_8] : memref<8x16xf32, #tpu.memory_space<vmem>>, vector<8x16xf32>
    %5 = vector.extract_strided_slice %4 {offsets = [0, 0], sizes = [4, 16], strides = [1, 1]} : vector<8x16xf32> to vector<4x16xf32>
    %6 = vector.extract_strided_slice %2 {offsets = [0, 0], sizes = [16, 1], strides = [1, 1]} : vector<16x4xf32> to vector<16x1xf32>
    %7 = vector.extract_strided_slice %5 {offsets = [0, 0], sizes = [1, 16], strides = [1, 1]} : vector<4x16xf32> to vector<1x16xf32>
    %8 = vector.broadcast %6 : vector<16x1xf32> to vector<16x16xf32>
    %9 = vector.broadcast %7 : vector<1x16xf32> to vector<16x16xf32>
    %10 = arith.mulf %8, %9 : vector<16x16xf32>
    %11 = vector.extract_strided_slice %2 {offsets = [0, 1], sizes = [16, 1], strides = [1, 1]} : vector<16x4xf32> to vector<16x1xf32>
    %12 = vector.extract_strided_slice %5 {offsets = [1, 0], sizes = [1, 16], strides = [1, 1]} : vector<4x16xf32> to vector<1x16xf32>
    %13 = vector.broadcast %11 : vector<16x1xf32> to vector<16x16xf32>
    %14 = vector.broadcast %12 : vector<1x16xf32> to vector<16x16xf32>
    %15 = arith.mulf %13, %14 : vector<16x16xf32>
    %16 = arith.addf %10, %15 : vector<16x16xf32>
    %17 = vector.extract_strided_slice %2 {offsets = [0, 2], sizes = [16, 1], strides = [1, 1]} : vector<16x4xf32> to vector<16x1xf32>
    %18 = vector.extract_strided_slice %5 {offsets = [2, 0], sizes = [1, 16], strides = [1, 1]} : vector<4x16xf32> to vector<1x16xf32>
    %19 = vector.broadcast %17 : vector<16x1xf32> to vector<16x16xf32>
    %20 = vector.broadcast %18 : vector<1x16xf32> to vector<16x16xf32>
    %21 = arith.mulf %19, %20 : vector<16x16xf32>
    %22 = arith.addf %16, %21 : vector<16x16xf32>
    %23 = vector.extract_strided_slice %2 {offsets = [0, 3], sizes = [16, 1], strides = [1, 1]} : vector<16x4xf32> to vector<16x1xf32>
    %24 = vector.extract_strided_slice %5 {offsets = [3, 0], sizes = [1, 16], strides = [1, 1]} : vector<4x16xf32> to vector<1x16xf32>
    %25 = vector.broadcast %23 : vector<16x1xf32> to vector<16x16xf32>
    %26 = vector.broadcast %24 : vector<1x16xf32> to vector<16x16xf32>
    %27 = arith.mulf %25, %26 : vector<16x16xf32>
    %28 = arith.addf %22, %27 : vector<16x16xf32>
    %29 = vector.broadcast %0 : vector<16x1xf32> to vector<16x16xf32>
    %30 = arith.addf %28, %29 : vector<16x16xf32>
    %cst = arith.constant 0.000000e+00 : f32
    %31 = vector.broadcast %cst : f32 to vector<16x16xf32>
    %32 = arith.maximumf %30, %31 : vector<16x16xf32>
    %33 = vector.extract_strided_slice %3 {offsets = [0, 0], sizes = [4, 1], strides = [1, 1]} : vector<4x16xf32> to vector<4x1xf32>
    %34 = vector.extract_strided_slice %32 {offsets = [0, 0], sizes = [1, 16], strides = [1, 1]} : vector<16x16xf32> to vector<1x16xf32>
    %35 = vector.broadcast %33 : vector<4x1xf32> to vector<4x16xf32>
    %36 = vector.broadcast %34 : vector<1x16xf32> to vector<4x16xf32>
    %37 = arith.mulf %35, %36 : vector<4x16xf32>
    %38 = vector.extract_strided_slice %3 {offsets = [0, 1], sizes = [4, 1], strides = [1, 1]} : vector<4x16xf32> to vector<4x1xf32>
    %39 = vector.extract_strided_slice %32 {offsets = [1, 0], sizes = [1, 16], strides = [1, 1]} : vector<16x16xf32> to vector<1x16xf32>
    %40 = vector.broadcast %38 : vector<4x1xf32> to vector<4x16xf32>
    %41 = vector.broadcast %39 : vector<1x16xf32> to vector<4x16xf32>
    %42 = arith.mulf %40, %41 : vector<4x16xf32>
    %43 = arith.addf %37, %42 : vector<4x16xf32>
    %44 = vector.extract_strided_slice %3 {offsets = [0, 2], sizes = [4, 1], strides = [1, 1]} : vector<4x16xf32> to vector<4x1xf32>
    %45 = vector.extract_strided_slice %32 {offsets = [2, 0], sizes = [1, 16], strides = [1, 1]} : vector<16x16xf32> to vector<1x16xf32>
    %46 = vector.broadcast %44 : vector<4x1xf32> to vector<4x16xf32>
    %47 = vector.broadcast %45 : vector<1x16xf32> to vector<4x16xf32>
    %48 = arith.mulf %46, %47 : vector<4x16xf32>
    %49 = arith.addf %43, %48 : vector<4x16xf32>
    %50 = vector.extract_strided_slice %3 {offsets = [0, 3], sizes = [4, 1], strides = [1, 1]} : vector<4x16xf32> to vector<4x1xf32>
    %51 = vector.extract_strided_slice %32 {offsets = [3, 0], sizes = [1, 16], strides = [1, 1]} : vector<16x16xf32> to vector<1x16xf32>
    %52 = vector.broadcast %50 : vector<4x1xf32> to vector<4x16xf32>
    %53 = vector.broadcast %51 : vector<1x16xf32> to vector<4x16xf32>
    %54 = arith.mulf %52, %53 : vector<4x16xf32>
    %55 = arith.addf %49, %54 : vector<4x16xf32>
    %56 = vector.extract_strided_slice %3 {offsets = [0, 4], sizes = [4, 1], strides = [1, 1]} : vector<4x16xf32> to vector<4x1xf32>
    %57 = vector.extract_strided_slice %32 {offsets = [4, 0], sizes = [1, 16], strides = [1, 1]} : vector<16x16xf32> to vector<1x16xf32>
    %58 = vector.broadcast %56 : vector<4x1xf32> to vector<4x16xf32>
    %59 = vector.broadcast %57 : vector<1x16xf32> to vector<4x16xf32>
    %60 = arith.mulf %58, %59 : vector<4x16xf32>
    %61 = arith.addf %55, %60 : vector<4x16xf32>
    %62 = vector.extract_strided_slice %3 {offsets = [0, 5], sizes = [4, 1], strides = [1, 1]} : vector<4x16xf32> to vector<4x1xf32>
    %63 = vector.extract_strided_slice %32 {offsets = [5, 0], sizes = [1, 16], strides = [1, 1]} : vector<16x16xf32> to vector<1x16xf32>
    %64 = vector.broadcast %62 : vector<4x1xf32> to vector<4x16xf32>
    %65 = vector.broadcast %63 : vector<1x16xf32> to vector<4x16xf32>
    %66 = arith.mulf %64, %65 : vector<4x16xf32>
    %67 = arith.addf %61, %66 : vector<4x16xf32>
    %68 = vector.extract_strided_slice %3 {offsets = [0, 6], sizes = [4, 1], strides = [1, 1]} : vector<4x16xf32> to vector<4x1xf32>
    %69 = vector.extract_strided_slice %32 {offsets = [6, 0], sizes = [1, 16], strides = [1, 1]} : vector<16x16xf32> to vector<1x16xf32>
    %70 = vector.broadcast %68 : vector<4x1xf32> to vector<4x16xf32>
    %71 = vector.broadcast %69 : vector<1x16xf32> to vector<4x16xf32>
    %72 = arith.mulf %70, %71 : vector<4x16xf32>
    %73 = arith.addf %67, %72 : vector<4x16xf32>
    %74 = vector.extract_strided_slice %3 {offsets = [0, 7], sizes = [4, 1], strides = [1, 1]} : vector<4x16xf32> to vector<4x1xf32>
    %75 = vector.extract_strided_slice %32 {offsets = [7, 0], sizes = [1, 16], strides = [1, 1]} : vector<16x16xf32> to vector<1x16xf32>
    %76 = vector.broadcast %74 : vector<4x1xf32> to vector<4x16xf32>
    %77 = vector.broadcast %75 : vector<1x16xf32> to vector<4x16xf32>
    %78 = arith.mulf %76, %77 : vector<4x16xf32>
    %79 = arith.addf %73, %78 : vector<4x16xf32>
    %80 = vector.extract_strided_slice %3 {offsets = [0, 8], sizes = [4, 1], strides = [1, 1]} : vector<4x16xf32> to vector<4x1xf32>
    %81 = vector.extract_strided_slice %32 {offsets = [8, 0], sizes = [1, 16], strides = [1, 1]} : vector<16x16xf32> to vector<1x16xf32>
    %82 = vector.broadcast %80 : vector<4x1xf32> to vector<4x16xf32>
    %83 = vector.broadcast %81 : vector<1x16xf32> to vector<4x16xf32>
    %84 = arith.mulf %82, %83 : vector<4x16xf32>
    %85 = arith.addf %79, %84 : vector<4x16xf32>
    %86 = vector.extract_strided_slice %3 {offsets = [0, 9], sizes = [4, 1], strides = [1, 1]} : vector<4x16xf32> to vector<4x1xf32>
    %87 = vector.extract_strided_slice %32 {offsets = [9, 0], sizes = [1, 16], strides = [1, 1]} : vector<16x16xf32> to vector<1x16xf32>
    %88 = vector.broadcast %86 : vector<4x1xf32> to vector<4x16xf32>
    %89 = vector.broadcast %87 : vector<1x16xf32> to vector<4x16xf32>
    %90 = arith.mulf %88, %89 : vector<4x16xf32>
    %91 = arith.addf %85, %90 : vector<4x16xf32>
    %92 = vector.extract_strided_slice %3 {offsets = [0, 10], sizes = [4, 1], strides = [1, 1]} : vector<4x16xf32> to vector<4x1xf32>
    %93 = vector.extract_strided_slice %32 {offsets = [10, 0], sizes = [1, 16], strides = [1, 1]} : vector<16x16xf32> to vector<1x16xf32>
    %94 = vector.broadcast %92 : vector<4x1xf32> to vector<4x16xf32>
    %95 = vector.broadcast %93 : vector<1x16xf32> to vector<4x16xf32>
    %96 = arith.mulf %94, %95 : vector<4x16xf32>
    %97 = arith.addf %91, %96 : vector<4x16xf32>
    %98 = vector.extract_strided_slice %3 {offsets = [0, 11], sizes = [4, 1], strides = [1, 1]} : vector<4x16xf32> to vector<4x1xf32>
    %99 = vector.extract_strided_slice %32 {offsets = [11, 0], sizes = [1, 16], strides = [1, 1]} : vector<16x16xf32> to vector<1x16xf32>
    %100 = vector.broadcast %98 : vector<4x1xf32> to vector<4x16xf32>
    %101 = vector.broadcast %99 : vector<1x16xf32> to vector<4x16xf32>
    %102 = arith.mulf %100, %101 : vector<4x16xf32>
    %103 = arith.addf %97, %102 : vector<4x16xf32>
    %104 = vector.extract_strided_slice %3 {offsets = [0, 12], sizes = [4, 1], strides = [1, 1]} : vector<4x16xf32> to vector<4x1xf32>
    %105 = vector.extract_strided_slice %32 {offsets = [12, 0], sizes = [1, 16], strides = [1, 1]} : vector<16x16xf32> to vector<1x16xf32>
    %106 = vector.broadcast %104 : vector<4x1xf32> to vector<4x16xf32>
    %107 = vector.broadcast %105 : vector<1x16xf32> to vector<4x16xf32>
    %108 = arith.mulf %106, %107 : vector<4x16xf32>
    %109 = arith.addf %103, %108 : vector<4x16xf32>
    %110 = vector.extract_strided_slice %3 {offsets = [0, 13], sizes = [4, 1], strides = [1, 1]} : vector<4x16xf32> to vector<4x1xf32>
    %111 = vector.extract_strided_slice %32 {offsets = [13, 0], sizes = [1, 16], strides = [1, 1]} : vector<16x16xf32> to vector<1x16xf32>
    %112 = vector.broadcast %110 : vector<4x1xf32> to vector<4x16xf32>
    %113 = vector.broadcast %111 : vector<1x16xf32> to vector<4x16xf32>
    %114 = arith.mulf %112, %113 : vector<4x16xf32>
    %115 = arith.addf %109, %114 : vector<4x16xf32>
    %116 = vector.extract_strided_slice %3 {offsets = [0, 14], sizes = [4, 1], strides = [1, 1]} : vector<4x16xf32> to vector<4x1xf32>
    %117 = vector.extract_strided_slice %32 {offsets = [14, 0], sizes = [1, 16], strides = [1, 1]} : vector<16x16xf32> to vector<1x16xf32>
    %118 = vector.broadcast %116 : vector<4x1xf32> to vector<4x16xf32>
    %119 = vector.broadcast %117 : vector<1x16xf32> to vector<4x16xf32>
    %120 = arith.mulf %118, %119 : vector<4x16xf32>
    %121 = arith.addf %115, %120 : vector<4x16xf32>
    %122 = vector.extract_strided_slice %3 {offsets = [0, 15], sizes = [4, 1], strides = [1, 1]} : vector<4x16xf32> to vector<4x1xf32>
    %123 = vector.extract_strided_slice %32 {offsets = [15, 0], sizes = [1, 16], strides = [1, 1]} : vector<16x16xf32> to vector<1x16xf32>
    %124 = vector.broadcast %122 : vector<4x1xf32> to vector<4x16xf32>
    %125 = vector.broadcast %123 : vector<1x16xf32> to vector<4x16xf32>
    %126 = arith.mulf %124, %125 : vector<4x16xf32>
    %127 = arith.addf %121, %126 : vector<4x16xf32>
    %128 = vector.broadcast %1 : vector<4x1xf32> to vector<4x16xf32>
    %129 = arith.addf %127, %128 : vector<4x16xf32>
    %130 = arith.addf %129, %5 : vector<4x16xf32>
    %131 = vector.extract_strided_slice %4 {offsets = [4, 0], sizes = [4, 16], strides = [1, 1]} : vector<8x16xf32> to vector<4x16xf32>
    %132 = vector.extract_strided_slice %2 {offsets = [0, 0], sizes = [16, 1], strides = [1, 1]} : vector<16x4xf32> to vector<16x1xf32>
    %133 = vector.extract_strided_slice %131 {offsets = [0, 0], sizes = [1, 16], strides = [1, 1]} : vector<4x16xf32> to vector<1x16xf32>
    %134 = vector.broadcast %132 : vector<16x1xf32> to vector<16x16xf32>
    %135 = vector.broadcast %133 : vector<1x16xf32> to vector<16x16xf32>
    %136 = arith.mulf %134, %135 : vector<16x16xf32>
    %137 = vector.extract_strided_slice %2 {offsets = [0, 1], sizes = [16, 1], strides = [1, 1]} : vector<16x4xf32> to vector<16x1xf32>
    %138 = vector.extract_strided_slice %131 {offsets = [1, 0], sizes = [1, 16], strides = [1, 1]} : vector<4x16xf32> to vector<1x16xf32>
    %139 = vector.broadcast %137 : vector<16x1xf32> to vector<16x16xf32>
    %140 = vector.broadcast %138 : vector<1x16xf32> to vector<16x16xf32>
    %141 = arith.mulf %139, %140 : vector<16x16xf32>
    %142 = arith.addf %136, %141 : vector<16x16xf32>
    %143 = vector.extract_strided_slice %2 {offsets = [0, 2], sizes = [16, 1], strides = [1, 1]} : vector<16x4xf32> to vector<16x1xf32>
    %144 = vector.extract_strided_slice %131 {offsets = [2, 0], sizes = [1, 16], strides = [1, 1]} : vector<4x16xf32> to vector<1x16xf32>
    %145 = vector.broadcast %143 : vector<16x1xf32> to vector<16x16xf32>
    %146 = vector.broadcast %144 : vector<1x16xf32> to vector<16x16xf32>
    %147 = arith.mulf %145, %146 : vector<16x16xf32>
    %148 = arith.addf %142, %147 : vector<16x16xf32>
    %149 = vector.extract_strided_slice %2 {offsets = [0, 3], sizes = [16, 1], strides = [1, 1]} : vector<16x4xf32> to vector<16x1xf32>
    %150 = vector.extract_strided_slice %131 {offsets = [3, 0], sizes = [1, 16], strides = [1, 1]} : vector<4x16xf32> to vector<1x16xf32>
    %151 = vector.broadcast %149 : vector<16x1xf32> to vector<16x16xf32>
    %152 = vector.broadcast %150 : vector<1x16xf32> to vector<16x16xf32>
    %153 = arith.mulf %151, %152 : vector<16x16xf32>
    %154 = arith.addf %148, %153 : vector<16x16xf32>
    %155 = vector.broadcast %0 : vector<16x1xf32> to vector<16x16xf32>
    %156 = arith.addf %154, %155 : vector<16x16xf32>
    %cst_9 = arith.constant 0.000000e+00 : f32
    %157 = vector.broadcast %cst_9 : f32 to vector<16x16xf32>
    %158 = arith.maximumf %156, %157 : vector<16x16xf32>
    %159 = vector.extract_strided_slice %3 {offsets = [0, 0], sizes = [4, 1], strides = [1, 1]} : vector<4x16xf32> to vector<4x1xf32>
    %160 = vector.extract_strided_slice %158 {offsets = [0, 0], sizes = [1, 16], strides = [1, 1]} : vector<16x16xf32> to vector<1x16xf32>
    %161 = vector.broadcast %159 : vector<4x1xf32> to vector<4x16xf32>
    %162 = vector.broadcast %160 : vector<1x16xf32> to vector<4x16xf32>
    %163 = arith.mulf %161, %162 : vector<4x16xf32>
    %164 = vector.extract_strided_slice %3 {offsets = [0, 1], sizes = [4, 1], strides = [1, 1]} : vector<4x16xf32> to vector<4x1xf32>
    %165 = vector.extract_strided_slice %158 {offsets = [1, 0], sizes = [1, 16], strides = [1, 1]} : vector<16x16xf32> to vector<1x16xf32>
    %166 = vector.broadcast %164 : vector<4x1xf32> to vector<4x16xf32>
    %167 = vector.broadcast %165 : vector<1x16xf32> to vector<4x16xf32>
    %168 = arith.mulf %166, %167 : vector<4x16xf32>
    %169 = arith.addf %163, %168 : vector<4x16xf32>
    %170 = vector.extract_strided_slice %3 {offsets = [0, 2], sizes = [4, 1], strides = [1, 1]} : vector<4x16xf32> to vector<4x1xf32>
    %171 = vector.extract_strided_slice %158 {offsets = [2, 0], sizes = [1, 16], strides = [1, 1]} : vector<16x16xf32> to vector<1x16xf32>
    %172 = vector.broadcast %170 : vector<4x1xf32> to vector<4x16xf32>
    %173 = vector.broadcast %171 : vector<1x16xf32> to vector<4x16xf32>
    %174 = arith.mulf %172, %173 : vector<4x16xf32>
    %175 = arith.addf %169, %174 : vector<4x16xf32>
    %176 = vector.extract_strided_slice %3 {offsets = [0, 3], sizes = [4, 1], strides = [1, 1]} : vector<4x16xf32> to vector<4x1xf32>
    %177 = vector.extract_strided_slice %158 {offsets = [3, 0], sizes = [1, 16], strides = [1, 1]} : vector<16x16xf32> to vector<1x16xf32>
    %178 = vector.broadcast %176 : vector<4x1xf32> to vector<4x16xf32>
    %179 = vector.broadcast %177 : vector<1x16xf32> to vector<4x16xf32>
    %180 = arith.mulf %178, %179 : vector<4x16xf32>
    %181 = arith.addf %175, %180 : vector<4x16xf32>
    %182 = vector.extract_strided_slice %3 {offsets = [0, 4], sizes = [4, 1], strides = [1, 1]} : vector<4x16xf32> to vector<4x1xf32>
    %183 = vector.extract_strided_slice %158 {offsets = [4, 0], sizes = [1, 16], strides = [1, 1]} : vector<16x16xf32> to vector<1x16xf32>
    %184 = vector.broadcast %182 : vector<4x1xf32> to vector<4x16xf32>
    %185 = vector.broadcast %183 : vector<1x16xf32> to vector<4x16xf32>
    %186 = arith.mulf %184, %185 : vector<4x16xf32>
    %187 = arith.addf %181, %186 : vector<4x16xf32>
    %188 = vector.extract_strided_slice %3 {offsets = [0, 5], sizes = [4, 1], strides = [1, 1]} : vector<4x16xf32> to vector<4x1xf32>
    %189 = vector.extract_strided_slice %158 {offsets = [5, 0], sizes = [1, 16], strides = [1, 1]} : vector<16x16xf32> to vector<1x16xf32>
    %190 = vector.broadcast %188 : vector<4x1xf32> to vector<4x16xf32>
    %191 = vector.broadcast %189 : vector<1x16xf32> to vector<4x16xf32>
    %192 = arith.mulf %190, %191 : vector<4x16xf32>
    %193 = arith.addf %187, %192 : vector<4x16xf32>
    %194 = vector.extract_strided_slice %3 {offsets = [0, 6], sizes = [4, 1], strides = [1, 1]} : vector<4x16xf32> to vector<4x1xf32>
    %195 = vector.extract_strided_slice %158 {offsets = [6, 0], sizes = [1, 16], strides = [1, 1]} : vector<16x16xf32> to vector<1x16xf32>
    %196 = vector.broadcast %194 : vector<4x1xf32> to vector<4x16xf32>
    %197 = vector.broadcast %195 : vector<1x16xf32> to vector<4x16xf32>
    %198 = arith.mulf %196, %197 : vector<4x16xf32>
    %199 = arith.addf %193, %198 : vector<4x16xf32>
    %200 = vector.extract_strided_slice %3 {offsets = [0, 7], sizes = [4, 1], strides = [1, 1]} : vector<4x16xf32> to vector<4x1xf32>
    %201 = vector.extract_strided_slice %158 {offsets = [7, 0], sizes = [1, 16], strides = [1, 1]} : vector<16x16xf32> to vector<1x16xf32>
    %202 = vector.broadcast %200 : vector<4x1xf32> to vector<4x16xf32>
    %203 = vector.broadcast %201 : vector<1x16xf32> to vector<4x16xf32>
    %204 = arith.mulf %202, %203 : vector<4x16xf32>
    %205 = arith.addf %199, %204 : vector<4x16xf32>
    %206 = vector.extract_strided_slice %3 {offsets = [0, 8], sizes = [4, 1], strides = [1, 1]} : vector<4x16xf32> to vector<4x1xf32>
    %207 = vector.extract_strided_slice %158 {offsets = [8, 0], sizes = [1, 16], strides = [1, 1]} : vector<16x16xf32> to vector<1x16xf32>
    %208 = vector.broadcast %206 : vector<4x1xf32> to vector<4x16xf32>
    %209 = vector.broadcast %207 : vector<1x16xf32> to vector<4x16xf32>
    %210 = arith.mulf %208, %209 : vector<4x16xf32>
    %211 = arith.addf %205, %210 : vector<4x16xf32>
    %212 = vector.extract_strided_slice %3 {offsets = [0, 9], sizes = [4, 1], strides = [1, 1]} : vector<4x16xf32> to vector<4x1xf32>
    %213 = vector.extract_strided_slice %158 {offsets = [9, 0], sizes = [1, 16], strides = [1, 1]} : vector<16x16xf32> to vector<1x16xf32>
    %214 = vector.broadcast %212 : vector<4x1xf32> to vector<4x16xf32>
    %215 = vector.broadcast %213 : vector<1x16xf32> to vector<4x16xf32>
    %216 = arith.mulf %214, %215 : vector<4x16xf32>
    %217 = arith.addf %211, %216 : vector<4x16xf32>
    %218 = vector.extract_strided_slice %3 {offsets = [0, 10], sizes = [4, 1], strides = [1, 1]} : vector<4x16xf32> to vector<4x1xf32>
    %219 = vector.extract_strided_slice %158 {offsets = [10, 0], sizes = [1, 16], strides = [1, 1]} : vector<16x16xf32> to vector<1x16xf32>
    %220 = vector.broadcast %218 : vector<4x1xf32> to vector<4x16xf32>
    %221 = vector.broadcast %219 : vector<1x16xf32> to vector<4x16xf32>
    %222 = arith.mulf %220, %221 : vector<4x16xf32>
    %223 = arith.addf %217, %222 : vector<4x16xf32>
    %224 = vector.extract_strided_slice %3 {offsets = [0, 11], sizes = [4, 1], strides = [1, 1]} : vector<4x16xf32> to vector<4x1xf32>
    %225 = vector.extract_strided_slice %158 {offsets = [11, 0], sizes = [1, 16], strides = [1, 1]} : vector<16x16xf32> to vector<1x16xf32>
    %226 = vector.broadcast %224 : vector<4x1xf32> to vector<4x16xf32>
    %227 = vector.broadcast %225 : vector<1x16xf32> to vector<4x16xf32>
    %228 = arith.mulf %226, %227 : vector<4x16xf32>
    %229 = arith.addf %223, %228 : vector<4x16xf32>
    %230 = vector.extract_strided_slice %3 {offsets = [0, 12], sizes = [4, 1], strides = [1, 1]} : vector<4x16xf32> to vector<4x1xf32>
    %231 = vector.extract_strided_slice %158 {offsets = [12, 0], sizes = [1, 16], strides = [1, 1]} : vector<16x16xf32> to vector<1x16xf32>
    %232 = vector.broadcast %230 : vector<4x1xf32> to vector<4x16xf32>
    %233 = vector.broadcast %231 : vector<1x16xf32> to vector<4x16xf32>
    %234 = arith.mulf %232, %233 : vector<4x16xf32>
    %235 = arith.addf %229, %234 : vector<4x16xf32>
    %236 = vector.extract_strided_slice %3 {offsets = [0, 13], sizes = [4, 1], strides = [1, 1]} : vector<4x16xf32> to vector<4x1xf32>
    %237 = vector.extract_strided_slice %158 {offsets = [13, 0], sizes = [1, 16], strides = [1, 1]} : vector<16x16xf32> to vector<1x16xf32>
    %238 = vector.broadcast %236 : vector<4x1xf32> to vector<4x16xf32>
    %239 = vector.broadcast %237 : vector<1x16xf32> to vector<4x16xf32>
    %240 = arith.mulf %238, %239 : vector<4x16xf32>
    %241 = arith.addf %235, %240 : vector<4x16xf32>
    %242 = vector.extract_strided_slice %3 {offsets = [0, 14], sizes = [4, 1], strides = [1, 1]} : vector<4x16xf32> to vector<4x1xf32>
    %243 = vector.extract_strided_slice %158 {offsets = [14, 0], sizes = [1, 16], strides = [1, 1]} : vector<16x16xf32> to vector<1x16xf32>
    %244 = vector.broadcast %242 : vector<4x1xf32> to vector<4x16xf32>
    %245 = vector.broadcast %243 : vector<1x16xf32> to vector<4x16xf32>
    %246 = arith.mulf %244, %245 : vector<4x16xf32>
    %247 = arith.addf %241, %246 : vector<4x16xf32>
    %248 = vector.extract_strided_slice %3 {offsets = [0, 15], sizes = [4, 1], strides = [1, 1]} : vector<4x16xf32> to vector<4x1xf32>
    %249 = vector.extract_strided_slice %158 {offsets = [15, 0], sizes = [1, 16], strides = [1, 1]} : vector<16x16xf32> to vector<1x16xf32>
    %250 = vector.broadcast %248 : vector<4x1xf32> to vector<4x16xf32>
    %251 = vector.broadcast %249 : vector<1x16xf32> to vector<4x16xf32>
    %252 = arith.mulf %250, %251 : vector<4x16xf32>
    %253 = arith.addf %247, %252 : vector<4x16xf32>
    %254 = vector.broadcast %1 : vector<4x1xf32> to vector<4x16xf32>
    %255 = arith.addf %253, %254 : vector<4x16xf32>
    %256 = arith.addf %255, %131 : vector<4x16xf32>
    %257 = tpu.concatenate %130, %256 in 0 : vector<4x16xf32>, vector<4x16xf32> -> vector<8x16xf32>
    %c0_10 = arith.constant 0 : index
    %c0_11 = arith.constant 0 : index
    %258 = vector.load %arg7[%c0_10, %c0_11] : memref<8x16xf32, #tpu.memory_space<vmem>>, vector<8x16xf32>
    tpu.vector_store %arg7[%c0_10, %c0_11], %257 {strides = array<i32>} : memref<8x16xf32, #tpu.memory_space<vmem>>, vector<8x16xf32>,
    return
  }
  func.func @transform_0(%arg0: i32, %arg1: i32) -> (i32, i32) {
    %c0_i32 = arith.constant 0 : i32
    return %arg0, %arg1 : i32, i32
  }
  func.func @transform_1(%arg0: i32, %arg1: i32) -> (i32, i32) {
    %c0_i32 = arith.constant 0 : i32
    %c0_i32_0 = arith.constant 0 : i32
    %c0_i32_1 = arith.constant 0 : i32
    return %c0_i32, %c0_i32_0 : i32, i32
  }
  func.func @transform_2(%arg0: i32, %arg1: i32) -> (i32, i32) {
    %c0_i32 = arith.constant 0 : i32
    %c0_i32_0 = arith.constant 0 : i32
    %c0_i32_1 = arith.constant 0 : i32
    return %c0_i32, %c0_i32_0 : i32, i32
  }
  func.func @transform_3(%arg0: i32, %arg1: i32) -> (i32, i32) {
    %c0_i32 = arith.constant 0 : i32
    %c0_i32_0 = arith.constant 0 : i32
    %c0_i32_1 = arith.constant 0 : i32
    return %c0_i32, %c0_i32_0 : i32, i32
  }
  func.func @transform_4(%arg0: i32, %arg1: i32) -> (i32, i32) {
    %c0_i32 = arith.constant 0 : i32
    %c0_i32_0 = arith.constant 0 : i32
    %c0_i32_1 = arith.constant 0 : i32
    return %c0_i32, %c0_i32_0 : i32, i32
  }
  func.func @transform_5(%arg0: i32, %arg1: i32) -> (i32, i32) {
    %c0_i32 = arith.constant 0 : i32
    return %arg0, %arg1 : i32, i32
  }
}

</mosaic_0001>

<bundles_post_ra>
// kernel: tpu_custom_call.1
= control target key start
LH: loop header
LB: loop body
LE: loop exit
PB: predicated region body
PF: predicated region fallthrough
CT: control target
= control target key end

     0   :  { %v376_v1 = vmov 2   ;;  %v377_v2 = vmov 1   ;;  %v378_v3 = vmov 0   ;;  %s499_s0 = inlined_call_operand.vmem [shape: f32[8,16], index: 0, kind: input, shape index: {}]   ;;  %s500_s1 = inlined_call_operand.vmem [shape: f32[16,4], index: 1, kind: input, shape index: {}]   ;;  %s501_s2 = inlined_call_operand.vmem [shape: f32[16,1], index: 2, kind: input, shape index: {}]   ;;  %s502_s3 = inlined_call_operand.vmem [shape: f32[4,16], index: 3, kind: input, shape index: {}]   ;;  %s503_s4 = inlined_call_operand.vmem [shape: f32[4,1], index: 4, kind: input, shape index: {}]   ;;  %s504_s5 = inlined_call_operand.hbm [shape: f32[8,16], index: 5, kind: output, shape index: {}]  }
   0x1   :  { %v24_v0 = vld [vmem:[%s500_s1] sm:$0xff]  ;;  %329 = vset.pattern.permute.xlu2 %v376_v1  ;;  %328 = vset.pattern.permute.xlu1 %v377_v2 }
   0x2   :  { %327 = vset.pattern.permute.xlu0 %v378_v3  ;;  %55 = vperm.xlu2 %329, %v24_v0  }
   0x3   :  { %10 = vsyncpa [#allocation3], 0  ;;  %42 = vperm.xlu1 %328, %v24_v0   ;;  %30 = vperm.xlu0 %327, %v24_v0   ;;  %v25_v4 = vld [vmem:[%s500_s1 + $0x8] sm:$0xff]  ;;  %v21_v5 = vld [vmem:[%s501_s2] sm:$0xff]  ;;  %v379_v6 = vmov 3   ;;  %v380_v9 = vmov 6  }
   0x4   :  { %v26_v7 = vld [vmem:[%s502_s3] sm:$0xf]  ;;  %v22_v8 = vld [vmem:[%s501_s2 + $0x8] sm:$0xff]  ;;  %v381_v10 = vmov 5   ;;  %v382_v11 = vmov 11   ;;  %v383_v12 = vmov 4  }
   0x5   :  { %v23_v13 = vld [vmem:[%s503_s4] sm:$0xf]  ;;  %v384_v14 = vmov 8   ;;  %v385_v15 = vmov 7   ;;  %v386_v16 = vmov 10   ;;  %v387_v17 = vmov 9  }
   0x6   :  { %v388_v18 = vmov 13   ;;  %v389_v19 = vmov 12   ;;  %v390_v20 = vmov 15   ;;  %v391_v21 = vmov 14   ;;  %v444_v26 = vld [vmem:[%s499_s0] sm:$0xff]  ;;  %s392_s0 = smov [#allocation2]  }
   0x7   :  { %v49_v29 = vperm.slane %v444_v26, 1  ;;  %v38_v30 = vperm.slane %v444_v26, 0  ;;  %v216_v31 = vperm.slane %v444_v26, 5  ;;  %v213_v32 = vperm.slane %v444_v26, 4  ;;  %s299_s28 = sshll.u32 %s392_s0, 4  ;;  %s301_s6 = sshll.u32 %s504_s5, 4  ;;  %s300_s28 = int_to_ptr.vmem [resolvable:$true] %s299_s28  ;;  %s302_s6 = int_to_ptr.hbm [resolvable:$true] %s301_s6 }
   0x8   :  { %v62_v34 = vperm.slane %v444_v26, 2  ;;  %v221_v37 = vperm.slane %v444_v26, 6  ;;  %v75_v40 = vperm.slane %v444_v26, 3  ;;  %v226_v41 = vperm.slane %v444_v26, 7 }
   0x9   :  { %vm290_vm0 = vcmask 1043456   ;;  %vm292_vm1 = vcmask 130048  }
   0xa   :  { %59 = vperm.xlu2 %329, %v25_v4  }
   0xb   :  { %46 = vperm.xlu1 %328, %v25_v4   ;;  %35 = vperm.xlu0 %327, %v25_v4  }
  0x12   :  { %332 = vset.pattern.permute.xlu2 %v378_v3 }
  0x13   :  { %331 = vset.pattern.permute.xlu1 %v379_v6  ;;  %330 = vset.pattern.permute.xlu0 %v379_v6 }
  0x14   :  { %72 = vperm.xlu1 %331, %v25_v4   ;;  %68 = vperm.xlu0 %330, %v24_v0  }
  0x15   :  { %82 = vperm.xlu2 %332, %v21_v5  }
  0x1c   :  { %333 = vset.pattern.permute.xlu1 %v378_v3  ;;  %334 = vset.pattern.permute.xlu0 %v377_v2 }
  0x1d   :  { %96 = vperm.xlu2 %332, %v26_v7   ;;  %102 = vperm.xlu0 %334, %v26_v7  }
  0x1e   :  { %87 = vperm.xlu1 %333, %v22_v8  }
  0x25   :  { %336 = vset.pattern.permute.xlu2 %v379_v6  ;;  %339 = vset.pattern.permute.xlu0 %v380_v9 }
  0x26   :  { %335 = vset.pattern.permute.xlu1 %v376_v1  ;;  %116 = vperm.xlu2 %336, %v26_v7  }
  0x27   :  { %137 = vperm.xlu0 %339, %v26_v7   ;;  %109 = vperm.xlu1 %335, %v26_v7  }
  0x2e   :  { %338 = vset.pattern.permute.xlu2 %v381_v10 }
  0x2f   :  { %344 = vset.pattern.permute.xlu0 %v382_v11  ;;  %337 = vset.pattern.permute.xlu1 %v383_v12 }
  0x30   :  { %130 = vperm.xlu2 %338, %v26_v7   ;;  %172 = vperm.xlu0 %344, %v26_v7  }
  0x31   :  { %123 = vperm.xlu1 %337, %v26_v7  }
  0x38   :  { %341 = vset.pattern.permute.xlu2 %v384_v14  ;;  %349 = vset.pattern.permute.xlu0 %v378_v3 }
  0x39   :  { %340 = vset.pattern.permute.xlu1 %v385_v15  ;;  %151 = vperm.xlu2 %341, %v26_v7  }
  0x3a   :  { %144 = vperm.xlu1 %340, %v26_v7   ;;  %208 = vperm.xlu0 %349, %v23_v13  }
  0x41   :  { %343 = vset.pattern.permute.xlu2 %v386_v16 }
  0x42   :  { %342 = vset.pattern.permute.xlu1 %v387_v17  ;;  %165 = vperm.xlu2 %343, %v26_v7  }
  0x43   :  { %158 = vperm.xlu1 %342, %v26_v7  }
  0x4a   :  { %346 = vset.pattern.permute.xlu2 %v388_v18 }
  0x4b   :  { %345 = vset.pattern.permute.xlu1 %v389_v19  ;;  %186 = vperm.xlu2 %346, %v26_v7  }
  0x4c   :  { %179 = vperm.xlu1 %345, %v26_v7  }
  0x53   :  { %348 = vset.pattern.permute.xlu2 %v390_v20 }
  0x54   :  { %347 = vset.pattern.permute.xlu1 %v391_v21  ;;  %200 = vperm.xlu2 %348, %v26_v7  }
  0x55   :  { %193 = vperm.xlu1 %347, %v26_v7  }
  0x5c   :  { %v56_v22 = vpop.permute.xlu2 %55 }
  0x5d   :  { %v63_v44 = vmul.f32 %v62_v34, %v56_v22  ;;  %v222_v46 = vmul.f32 %v221_v37, %v56_v22 }
  0x64   :  { %v60_v25 = vpop.permute.xlu2 %59 }
  0x65   :  { %v64_v22 = vmul.f32 %v62_v34, %v60_v25 }
  0x6f   :  { %v83_v33 = vpop.permute.xlu2 %82 }
  0x75   :  { %v43_v23 = vpop.permute.xlu1 %42  ;;  %v31_v24 = vpop.permute.xlu0 %30 }
  0x76   :  { %v50_v35 = vmul.f32 %v49_v29, %v43_v23  ;;  %v39_v36 = vmul.f32 %v38_v30, %v31_v24  ;;  %v217_v38 = vmul.f32 %v216_v31, %v43_v23  ;;  %v214_v39 = vmul.f32 %v213_v32, %v31_v24 }
  0x77   :  { %v97_v50 = vpop.permute.xlu2 %96  ;;  %v223_v23 = vmul.f32 %v221_v37, %v60_v25 }
  0x78   :  { %v52_v45 = vadd.f32 %v50_v35, %v39_v36  ;;  %v219_v47 = vadd.f32 %v217_v38, %v214_v39 }
  0x7a   :  { %v65_v51 = vadd.f32 %v63_v44, %v52_v45  ;;  %v224_v52 = vadd.f32 %v222_v46, %v219_v47 }
  0x7d   :  { %v47_v27 = vpop.permute.xlu1 %46  ;;  %v36_v28 = vpop.permute.xlu0 %35 }
  0x7e   :  { %v51_v3 = vmul.f32 %v49_v29, %v47_v27  ;;  %v218_v4 = vmul.f32 %v216_v31, %v47_v27  ;;  %v40_v5 = vmul.f32 %v38_v30, %v36_v28  ;;  %v215_v6 = vmul.f32 %v213_v32, %v36_v28 }
  0x80   :  { %v117_v58 = vpop.permute.xlu2 %116  ;;  %v53_v16 = vadd.f32 %v51_v3, %v40_v5  ;;  %v220_v17 = vadd.f32 %v218_v4, %v215_v6 }
  0x82   :  { %v225_v35 = vadd.f32 %v223_v23, %v220_v17 }
  0x86   :  { %v73_v42 = vpop.permute.xlu1 %72  ;;  %v69_v43 = vpop.permute.xlu0 %68 }
  0x87   :  { %v76_v48 = vmul.f32 %v75_v40, %v69_v43  ;;  %v227_v49 = vmul.f32 %v226_v41, %v69_v43  ;;  %v77_v24 = vmul.f32 %v75_v40, %v73_v42  ;;  %v228_v27 = vmul.f32 %v226_v41, %v73_v42 }
  0x89   :  { %v78_v53 = vadd.f32 %v76_v48, %v65_v51  ;;  %v229_v54 = vadd.f32 %v227_v49, %v224_v52  ;;  %v230_v45 = vadd.f32 %v228_v27, %v225_v35 }
  0x8a   :  { %v131_v13 = vpop.permute.xlu2 %130 }
  0x8b   :  { %v90_v56 = vadd.f32 %v83_v33, %v78_v53  ;;  %v231_v57 = vadd.f32 %v229_v54, %v83_v33  ;;  %v66_v33 = vadd.f32 %v64_v22, %v53_v16 }
  0x8d   :  { %v454_v59 = vmax.f32 %v90_v56, 0.0  ;;  %v456_v60 = vmax.f32 %v231_v57, 0.0  ;;  %v79_v44 = vadd.f32 %v77_v24, %v66_v33 }
  0x8f   :  { %v99_v61 = vperm.slane %v454_v59, 0  ;;  %v105_v62 = vperm.slane %v454_v59, 1  ;;  %v103_v0 = vpop.permute.xlu0 %102  ;;  %v235_v1 = vperm.slane %v456_v60, 0  ;;  %v237_v2 = vperm.slane %v456_v60, 1 }
  0x90   :  { %v88_v55 = vpop.permute.xlu1 %87  ;;  %v112_v11 = vperm.slane %v454_v59, 2  ;;  %v240_v12 = vperm.slane %v456_v60, 2  ;;  %v119_v20 = vperm.slane %v454_v59, 3  ;;  %v243_v21 = vperm.slane %v456_v60, 3 }
  0x91   :  { %v100_v7 = vmul.f32 %v99_v61, %v97_v50  ;;  %v106_v8 = vmul.f32 %v105_v62, %v103_v0  ;;  %v236_v9 = vmul.f32 %v235_v1, %v97_v50  ;;  %v238_v10 = vmul.f32 %v237_v2, %v103_v0 }
  0x92   :  { %v126_v31 = vperm.slane %v454_v59, 4  ;;  %v246_v32 = vperm.slane %v456_v60, 4  ;;  %v120_v36 = vmul.f32 %v119_v20, %v117_v58  ;;  %v244_v39 = vmul.f32 %v243_v21, %v117_v58 }
  0x93   :  { %v107_v18 = vadd.f32 %v106_v8, %v100_v7  ;;  %v239_v19 = vadd.f32 %v238_v10, %v236_v9  ;;  %v133_v34 = vperm.slane %v454_v59, 5  ;;  %v249_v25 = vperm.slane %v456_v60, 5  ;;  %v152_v46 = vpop.permute.xlu2 %151 }
  0x94   :  { %v91_v41 = vadd.f32 %v88_v55, %v79_v44  ;;  %v232_v42 = vadd.f32 %v230_v45, %v88_v55  ;;  %v140_v56 = vperm.slane %v454_v59, 6  ;;  %v252_v57 = vperm.slane %v456_v60, 6 }
  0x95   :  { %v134_v49 = vmul.f32 %v133_v34, %v131_v13  ;;  %v250_v50 = vmul.f32 %v249_v25, %v131_v13  ;;  %v147_v62 = vperm.slane %v454_v59, 7  ;;  %v255_v55 = vperm.slane %v456_v60, 7 }
  0x96   :  { %v470_v52 = vmax.f32 %v91_v41, 0.0  ;;  %v472_v53 = vmax.f32 %v232_v42, 0.0 }
  0x98   :  { %v154_v3 = vperm.slane %v470_v52, 0  ;;  %v258_v4 = vperm.slane %v472_v53, 0  ;;  %v161_v10 = vperm.slane %v470_v52, 1  ;;  %v168_v17 = vperm.slane %v470_v52, 2 }
  0x99   :  { %v110_v63 = vpop.permute.xlu1 %109  ;;  %v138_v54 = vpop.permute.xlu0 %137  ;;  %v175_v24 = vperm.slane %v470_v52, 3  ;;  %v267_v27 = vperm.slane %v472_v53, 3  ;;  %v189_v45 = vperm.slane %v470_v52, 5  ;;  %v273_v34 = vperm.slane %v472_v53, 5 }
  0x9a   :  { %v113_v14 = vmul.f32 %v112_v11, %v110_v63  ;;  %v241_v15 = vmul.f32 %v240_v12, %v110_v63  ;;  %v141_v63 = vmul.f32 %v140_v56, %v138_v54  ;;  %v253_v0 = vmul.f32 %v252_v57, %v138_v54 }
  0x9b   :  { %v261_v11 = vperm.slane %v472_v53, 1  ;;  %v155_v12 = vmul.f32 %v154_v3, %v152_v46  ;;  %v259_v60 = vmul.f32 %v258_v4, %v152_v46  ;;  %v196_v42 = vperm.slane %v470_v52, 6 }
  0x9c   :  { %v114_v29 = vadd.f32 %v113_v14, %v107_v18  ;;  %v242_v30 = vadd.f32 %v241_v15, %v239_v19  ;;  %v166_v7 = vpop.permute.xlu2 %165  ;;  %v264_v18 = vperm.slane %v472_v53, 2  ;;  %v276_v46 = vperm.slane %v472_v53, 6 }
  0x9d   :  { %v169_v21 = vmul.f32 %v168_v17, %v166_v7 }
  0x9e   :  { %v121_v37 = vadd.f32 %v120_v36, %v114_v29  ;;  %v245_v40 = vadd.f32 %v244_v39, %v242_v30  ;;  %v265_v22 = vmul.f32 %v264_v18, %v166_v7 }
  0xa2   :  { %v173_v23 = vpop.permute.xlu0 %172 }
  0xa3   :  { %v124_v28 = vpop.permute.xlu1 %123  ;;  %v176_v35 = vmul.f32 %v175_v24, %v173_v23  ;;  %v268_v36 = vmul.f32 %v267_v27, %v173_v23 }
  0xa4   :  { %v127_v38 = vmul.f32 %v126_v31, %v124_v28  ;;  %v247_v43 = vmul.f32 %v246_v32, %v124_v28  ;;  %v182_v31 = vperm.slane %v470_v52, 4  ;;  %v270_v32 = vperm.slane %v472_v53, 4 }
  0xa5   :  { %v187_v28 = vpop.permute.xlu2 %186 }
  0xa6   :  { %v128_v47 = vadd.f32 %v127_v38, %v121_v37  ;;  %v248_v48 = vadd.f32 %v247_v43, %v245_v40  ;;  %v190_v40 = vmul.f32 %v189_v45, %v187_v28  ;;  %v274_v41 = vmul.f32 %v273_v34, %v187_v28 }
  0xa8   :  { %v135_v58 = vadd.f32 %v134_v49, %v128_v47  ;;  %v251_v61 = vadd.f32 %v250_v50, %v248_v48  ;;  %v203_v47 = vperm.slane %v470_v52, 7  ;;  %v279_v48 = vperm.slane %v472_v53, 7 }
  0xaa   :  { %v142_v5 = vadd.f32 %v141_v63, %v135_v58  ;;  %v254_v6 = vadd.f32 %v253_v0, %v251_v61  ;;  %v284_v0 = vrot.slane %v444_v26, 4 }
  0xac   :  { %v145_v51 = vpop.permute.xlu1 %144  ;;  %v209_v63 = vpop.permute.xlu0 %208 }
  0xad   :  { %v148_v1 = vmul.f32 %v147_v62, %v145_v51  ;;  %v256_v2 = vmul.f32 %v255_v55, %v145_v51 }
  0xae   :  { %v201_v49 = vpop.permute.xlu2 %200 }
  0xaf   :  { %v149_v8 = vadd.f32 %v148_v1, %v142_v5  ;;  %v257_v9 = vadd.f32 %v256_v2, %v254_v6  ;;  %v204_v58 = vmul.f32 %v203_v47, %v201_v49  ;;  %v280_v61 = vmul.f32 %v279_v48, %v201_v49 }
  0xb1   :  { %v156_v15 = vadd.f32 %v155_v12, %v149_v8  ;;  %v260_v16 = vadd.f32 %v259_v60, %v257_v9 }
  0xb5   :  { %v159_v59 = vpop.permute.xlu1 %158 }
  0xb6   :  { %v162_v13 = vmul.f32 %v161_v10, %v159_v59  ;;  %v262_v14 = vmul.f32 %v261_v11, %v159_v59 }
  0xb8   :  { %v163_v19 = vadd.f32 %v162_v13, %v156_v15  ;;  %v263_v20 = vadd.f32 %v262_v14, %v260_v16 }
  0xba   :  { %v170_v29 = vadd.f32 %v169_v21, %v163_v19  ;;  %v266_v30 = vadd.f32 %v265_v22, %v263_v20 }
  0xbc   :  { %v177_v43 = vadd.f32 %v176_v35, %v170_v29  ;;  %v269_v44 = vadd.f32 %v268_v36, %v266_v30 }
  0xbe   :  { %v180_v33 = vpop.permute.xlu1 %179 }
  0xbf   :  { %v183_v38 = vmul.f32 %v182_v31, %v180_v33  ;;  %v271_v39 = vmul.f32 %v270_v32, %v180_v33 }
  0xc1   :  { %v184_v25 = vadd.f32 %v183_v38, %v177_v43  ;;  %v272_v37 = vadd.f32 %v271_v39, %v269_v44 }
  0xc3   :  { %v191_v51 = vadd.f32 %v190_v40, %v184_v25  ;;  %v275_v56 = vadd.f32 %v274_v41, %v272_v37 }
  0xc7   :  { %v194_v50 = vpop.permute.xlu1 %193 }
  0xc8   :  { %v197_v54 = vmul.f32 %v196_v42, %v194_v50  ;;  %v277_v57 = vmul.f32 %v276_v46, %v194_v50 }
  0xca   :  { %v198_v62 = vadd.f32 %v197_v54, %v191_v51  ;;  %v278_v55 = vadd.f32 %v277_v57, %v275_v56 }
  0xcc   :  { %v205_v1 = vadd.f32 %v204_v58, %v198_v62  ;;  %v281_v2 = vadd.f32 %v280_v61, %v278_v55 }
  0xce   :  { %v211_v3 = vadd.f32 %v209_v63, %v205_v1  ;;  %v282_v4 = vadd.f32 %v281_v2, %v209_v63 }
  0xd0   :  { %v286_v52 = vadd.f32 %v284_v0, %v282_v4  ;;  %v212_v53 = vadd.f32 %v211_v3, %v444_v26 }
  0xd2   :  { %v288_v5 = vrot.slane %v286_v52, 4 }
  0xd4   :  { %v291_v6 = vsel %vm290_vm0, %v212_v53, %v288_v5 }
  0xd5   :  { %293 = vst.msk [vmem:[#allocation2] sm:$0xff] %vm292_vm1, %v291_v6 }
  0xd6   :  { %304 = dma.vmem_to_hbm [thread:$0]  %s300_s28, 128, %s302_s6, [#allocation3]  }
  0xd7   :  { %374 = dma.done.wait [#allocation3], 128  }
  0xd8   :  { %375 = vsyncadd [#allocation3], 4294967168 }
  0xd9   :  { %309 = vsyncpa [#allocation3], 1 }

</bundles_post_ra>
